<compile_context>
chip_gen: v7x
topology: tpu7x:2x2x1
jax: 0.10.0
libtpu: 0.0.40
codegen_flags: <defaults>
</compile_context>

<pallas_src>
import functools
import math

import jax
import jax.numpy as jnp
from jax.experimental import pallas as pl
from jax.experimental.pallas import tpu as pltpu


def mha_kernel(q_ref, k_ref, v_ref, wq_ref, wk_ref, wv_ref, wo_ref, out_ref,
               *, n_heads, d_k):
    # Current batch element: (S, D) f32 activations.
    q = q_ref[0]
    k = k_ref[0]
    v = v_ref[0]
    S = q.shape[0]

    def mm(a_bf16, b_bf16):
        # bf16 operands on the MXU, f32 accumulation.
        return jnp.dot(a_bf16, b_bf16, preferred_element_type=jnp.float32)

    # ---- Q/K/V projections (bias-free Linear); cast once to bf16 for the per-head matmuls ----
    Q = mm(q.astype(jnp.bfloat16), wq_ref[...]).astype(jnp.bfloat16)   # (S, D)
    K = mm(k.astype(jnp.bfloat16), wk_ref[...]).astype(jnp.bfloat16)
    V = mm(v.astype(jnp.bfloat16), wv_ref[...]).astype(jnp.bfloat16)

    # ---- causal mask: keep key positions <= query position (built once, reused per head) ----
    row = jax.lax.broadcasted_iota(jnp.int32, (S, S), 0)
    col = jax.lax.broadcasted_iota(jnp.int32, (S, S), 1)
    keep = col <= row

    scale = jnp.float32(1.0 / math.sqrt(d_k))
    neg_big = jnp.float32(-1e9)

    # ---- per-head scaled-dot-product attention (h is small -> fully unrolled) ----
    head_outs = []
    for h in range(n_heads):
        lo = h * d_k
        q_h = Q[:, lo:lo + d_k]       # (S, d_k) bf16
        k_h = K[:, lo:lo + d_k]
        v_h = V[:, lo:lo + d_k]

        # scores = q_h @ k_h^T   (contract the d_k axis of both operands)
        scores = jax.lax.dot_general(
            q_h, k_h, (((1,), (1,)), ((), ())),
            preferred_element_type=jnp.float32) * scale            # (S, S) f32
        scores = jnp.where(keep, scores, neg_big)

        # numerically-stable softmax over keys (f32); reciprocal on the EUP
        m = jnp.max(scores, axis=-1, keepdims=True)
        p = jnp.exp(scores - m)
        denom = jnp.sum(p, axis=-1, keepdims=True)
        p = p * pl.reciprocal(denom, approx=True)

        head_outs.append(mm(p.astype(jnp.bfloat16), v_h))           # (S, d_k) f32

    heads = jnp.concatenate(head_outs, axis=-1)                      # (S, D) f32

    # ---- output projection ----
    out_ref[0] = mm(heads.astype(jnp.bfloat16), wo_ref[...]).astype(out_ref.dtype)


def multi_head_attention(q, k, v, w_q, w_k, w_v, w_o, *, n_heads):
    """q, k, v: (B, S, D) f32.  Weights: (D, D) stored as (d_in, d_out),
    i.e. the transpose of PyTorch nn.Linear.weight."""
    B, S, D = q.shape
    assert D % n_heads == 0
    d_k = D // n_heads

    # Cast weights once on the wrapper side (bf16 MXU operands).
    w_q = w_q.astype(jnp.bfloat16)
    w_k = w_k.astype(jnp.bfloat16)
    w_v = w_v.astype(jnp.bfloat16)
    w_o = w_o.astype(jnp.bfloat16)

    kernel = functools.partial(mha_kernel, n_heads=n_heads, d_k=d_k)

    act_spec = pl.BlockSpec((1, S, D), lambda b: (b, 0, 0))
    w_spec = pl.BlockSpec((D, D), lambda b: (0, 0))   # constant -> stays VMEM-resident

    grid_spec = pltpu.PrefetchScalarGridSpec(
        num_scalar_prefetch=0,
        grid=(B,),
        in_specs=[act_spec, act_spec, act_spec, w_spec, w_spec, w_spec, w_spec],
        out_specs=pl.BlockSpec((1, S, D), lambda b: (b, 0, 0)),
    )

    return pl.pallas_call(
        kernel,
        out_shape=jax.ShapeDtypeStruct((B, S, D), jnp.float32),
        grid_spec=grid_spec,
        compiler_params=pltpu.CompilerParams(
            dimension_semantics=("parallel",)),
    )(q, k, v, w_q, w_k, w_v, w_o)


if __name__ == "__main__":
    # Small shapes consistent with the module (lane-dense d_model).
    B, S, D, H = 2, 8, 128, 4
    d_k = D // H

    key = jax.random.PRNGKey(0)
    kq, kk, kv, k1, k2, k3, k4 = jax.random.split(key, 7)

    q = jax.random.normal(kq, (B, S, D), dtype=jnp.float32)
    k = jax.random.normal(kk, (B, S, D), dtype=jnp.float32)
    v = jax.random.normal(kv, (B, S, D), dtype=jnp.float32)

    w_scale = 1.0 / math.sqrt(D)
    w_q = jax.random.normal(k1, (D, D), dtype=jnp.float32) * w_scale
    w_k = jax.random.normal(k2, (D, D), dtype=jnp.float32) * w_scale
    w_v = jax.random.normal(k3, (D, D), dtype=jnp.float32) * w_scale
    w_o = jax.random.normal(k4, (D, D), dtype=jnp.float32) * w_scale

    out = multi_head_attention(q, k, v, w_q, w_k, w_v, w_o, n_heads=H)
    out = jax.block_until_ready(out)

    # ---- pure-JAX reference (same bf16-operand / f32-accumulate recipe) ----
    def bdot(a, b):
        return jnp.einsum("...ij,...jk->...ik",
                          a.astype(jnp.bfloat16), b.astype(jnp.bfloat16),
                          preferred_element_type=jnp.float32)

    Qr = bdot(q, w_q).reshape(B, S, H, d_k).transpose(0, 2, 1, 3)
    Kr = bdot(k, w_k).reshape(B, S, H, d_k).transpose(0, 2, 1, 3)
    Vr = bdot(v, w_v).reshape(B, S, H, d_k).transpose(0, 2, 1, 3)
    scores = jnp.einsum("bhqd,bhkd->bhqk",
                        Qr.astype(jnp.bfloat16), Kr.astype(jnp.bfloat16),
                        preferred_element_type=jnp.float32) / math.sqrt(d_k)
    causal = jnp.tril(jnp.ones((S, S), dtype=bool))
    scores = jnp.where(causal[None, None], scores, jnp.float32(-1e9))
    probs = jax.nn.softmax(scores, axis=-1)
    heads = jnp.einsum("bhqk,bhkd->bhqd",
                       probs.astype(jnp.bfloat16), Vr.astype(jnp.bfloat16),
                       preferred_element_type=jnp.float32)
    heads = heads.transpose(0, 2, 1, 3).reshape(B, S, D)
    ref = bdot(heads, w_o)

    assert out.shape == (B, S, D)
    max_err = float(jnp.max(jnp.abs(out - ref)))
    assert jnp.allclose(out, ref, atol=2e-2, rtol=2e-2), max_err

    print("KERNEL_OK")
</pallas_src>

<mosaic_0001>
module attributes {stable_mosaic.version = 11 : i64} {
  func.func @mha_kernel(%arg0: i32, %arg1: memref<1x8x128xf32, #tpu.memory_space<vmem>>, %arg2: memref<1x8x128xf32, #tpu.memory_space<vmem>>, %arg3: memref<1x8x128xf32, #tpu.memory_space<vmem>>, %arg4: memref<128x128xbf16, #tpu.memory_space<vmem>>, %arg5: memref<128x128xbf16, #tpu.memory_space<vmem>>, %arg6: memref<128x128xbf16, #tpu.memory_space<vmem>>, %arg7: memref<128x128xbf16, #tpu.memory_space<vmem>>, %arg8: memref<1x8x128xf32, #tpu.memory_space<vmem>>) attributes {dimension_semantics = [#tpu.dimension_semantics<parallel>], iteration_bounds = array<i64: 2>, scalar_prefetch = 0 : i64, scratch_operands = 0 : i64, tpu.core_type = #tpu.core_type<tc>, window_params = [{transform_indices = @transform_0, window_bounds = array<i64: 1, 8, 128>}, {transform_indices = @transform_1, window_bounds = array<i64: 1, 8, 128>}, {transform_indices = @transform_2, window_bounds = array<i64: 1, 8, 128>}, {pipeline_mode = #tpu.pipeline_mode<synchronous>, transform_indices = @transform_3, window_bounds = array<i64: 128, 128>}, {pipeline_mode = #tpu.pipeline_mode<synchronous>, transform_indices = @transform_4, window_bounds = array<i64: 128, 128>}, {pipeline_mode = #tpu.pipeline_mode<synchronous>, transform_indices = @transform_5, window_bounds = array<i64: 128, 128>}, {pipeline_mode = #tpu.pipeline_mode<synchronous>, transform_indices = @transform_6, window_bounds = array<i64: 128, 128>}, {transform_indices = @transform_7, window_bounds = array<i64: 1, 8, 128>}]} {
    %c0 = arith.constant 0 : index
    %c0_0 = arith.constant 0 : index
    %c0_1 = arith.constant 0 : index
    %0 = vector.load %arg1[%c0, %c0_0, %c0_1] : memref<1x8x128xf32, #tpu.memory_space<vmem>>, vector<1x8x128xf32>
    %1 = vector.shape_cast %0 : vector<1x8x128xf32> to vector<8x128xf32>
    %c0_2 = arith.constant 0 : index
    %c0_3 = arith.constant 0 : index
    %c0_4 = arith.constant 0 : index
    %2 = vector.load %arg2[%c0_2, %c0_3, %c0_4] : memref<1x8x128xf32, #tpu.memory_space<vmem>>, vector<1x8x128xf32>
    %3 = vector.shape_cast %2 : vector<1x8x128xf32> to vector<8x128xf32>
    %c0_5 = arith.constant 0 : index
    %c0_6 = arith.constant 0 : index
    %c0_7 = arith.constant 0 : index
    %4 = vector.load %arg3[%c0_5, %c0_6, %c0_7] : memref<1x8x128xf32, #tpu.memory_space<vmem>>, vector<1x8x128xf32>
    %5 = vector.shape_cast %4 : vector<1x8x128xf32> to vector<8x128xf32>
    %6 = arith.truncf %1 : vector<8x128xf32> to vector<8x128xbf16>
    %c0_8 = arith.constant 0 : index
    %c0_9 = arith.constant 0 : index
    %7 = vector.load %arg4[%c0_8, %c0_9] : memref<128x128xbf16, #tpu.memory_space<vmem>>, vector<128x128xbf16>
    %cst = arith.constant dense<0.000000e+00> : vector<8x128xf32>
    %8 = tpu.matmul %6, %7, %cst {dimension_numbers = #tpu.dot_dimension_numbers<[1], [0], [0], [1], [0, 0, 1, 1], [], []>} : vector<8x128xbf16>, vector<128x128xbf16>, vector<8x128xf32> -> vector<8x128xf32>
    %9 = arith.truncf %8 : vector<8x128xf32> to vector<8x128xbf16>
    %10 = arith.truncf %3 : vector<8x128xf32> to vector<8x128xbf16>
    %c0_10 = arith.constant 0 : index
    %c0_11 = arith.constant 0 : index
    %11 = vector.load %arg5[%c0_10, %c0_11] : memref<128x128xbf16, #tpu.memory_space<vmem>>, vector<128x128xbf16>
    %cst_12 = arith.constant dense<0.000000e+00> : vector<8x128xf32>
    %12 = tpu.matmul %10, %11, %cst_12 {dimension_numbers = #tpu.dot_dimension_numbers<[1], [0], [0], [1], [0, 0, 1, 1], [], []>} : vector<8x128xbf16>, vector<128x128xbf16>, vector<8x128xf32> -> vector<8x128xf32>
    %13 = arith.truncf %12 : vector<8x128xf32> to vector<8x128xbf16>
    %14 = arith.truncf %5 : vector<8x128xf32> to vector<8x128xbf16>
    %c0_13 = arith.constant 0 : index
    %c0_14 = arith.constant 0 : index
    %15 = vector.load %arg6[%c0_13, %c0_14] : memref<128x128xbf16, #tpu.memory_space<vmem>>, vector<128x128xbf16>
    %cst_15 = arith.constant dense<0.000000e+00> : vector<8x128xf32>
    %16 = tpu.matmul %14, %15, %cst_15 {dimension_numbers = #tpu.dot_dimension_numbers<[1], [0], [0], [1], [0, 0, 1, 1], [], []>} : vector<8x128xbf16>, vector<128x128xbf16>, vector<8x128xf32> -> vector<8x128xf32>
    %17 = arith.truncf %16 : vector<8x128xf32> to vector<8x128xbf16>
    %18 = tpu.iota {dimensions = array<i32: 0>} : vector<8x8xi32>
    %19 = tpu.iota {dimensions = array<i32: 1>} : vector<8x8xi32>
    %20 = arith.cmpi sle, %19, %18 : vector<8x8xi32>
    %21 = vector.extract_strided_slice %9 {offsets = [0, 0], sizes = [8, 32], strides = [1, 1]} : vector<8x128xbf16> to vector<8x32xbf16>
    %22 = vector.extract_strided_slice %13 {offsets = [0, 0], sizes = [8, 32], strides = [1, 1]} : vector<8x128xbf16> to vector<8x32xbf16>
    %23 = vector.extract_strided_slice %17 {offsets = [0, 0], sizes = [8, 32], strides = [1, 1]} : vector<8x128xbf16> to vector<8x32xbf16>
    %cst_16 = arith.constant dense<0.000000e+00> : vector<8x8xf32>
    %24 = tpu.matmul %21, %22, %cst_16 {dimension_numbers = #tpu.dot_dimension_numbers<[1], [1], [0], [0], [0, 0, 1, 0], [], []>} : vector<8x32xbf16>, vector<8x32xbf16>, vector<8x8xf32> -> vector<8x8xf32>
    %cst_17 = arith.constant 0.176776692 : f32
    %25 = vector.broadcast %cst_17 : f32 to vector<8x8xf32>
    %26 = arith.mulf %24, %25 : vector<8x8xf32>
    %cst_18 = arith.constant -1.000000e+09 : f32
    %27 = vector.broadcast %cst_18 : f32 to vector<8x8xf32>
    %28 = arith.select %20, %26, %27 : vector<8x8xi1>, vector<8x8xf32>
    %cst_19 = arith.constant dense<0xFF800000> : vector<8xf32>
    %29 = vector.multi_reduction <maximumf>, %28, %cst_19 [1] : vector<8x8xf32> to vector<8xf32>
    %30 = vector.shape_cast %29 : vector<8xf32> to vector<8x1xf32>
    %31 = vector.broadcast %30 : vector<8x1xf32> to vector<8x8xf32>
    %32 = arith.subf %28, %31 : vector<8x8xf32>
    %33 = math.exp %32 : vector<8x8xf32>
    %cst_20 = arith.constant dense<0.000000e+00> : vector<8xf32>
    %34 = vector.multi_reduction <add>, %33, %cst_20 [1] : vector<8x8xf32> to vector<8xf32>
    %35 = vector.shape_cast %34 : vector<8xf32> to vector<8x1xf32>
    %36 = tpu.reciprocal %35 {approx = true} : vector<8x1xf32> -> vector<8x1xf32>
    %37 = vector.broadcast %36 : vector<8x1xf32> to vector<8x8xf32>
    %38 = arith.mulf %33, %37 : vector<8x8xf32>
    %39 = arith.truncf %38 : vector<8x8xf32> to vector<8x8xbf16>
    %cst_21 = arith.constant dense<0.000000e+00> : vector<8x32xf32>
    %40 = tpu.matmul %39, %23, %cst_21 {dimension_numbers = #tpu.dot_dimension_numbers<[1], [0], [0], [1], [0, 0, 1, 1], [], []>} : vector<8x8xbf16>, vector<8x32xbf16>, vector<8x32xf32> -> vector<8x32xf32>
    %41 = vector.extract_strided_slice %9 {offsets = [0, 32], sizes = [8, 32], strides = [1, 1]} : vector<8x128xbf16> to vector<8x32xbf16>
    %42 = vector.extract_strided_slice %13 {offsets = [0, 32], sizes = [8, 32], strides = [1, 1]} : vector<8x128xbf16> to vector<8x32xbf16>
    %43 = vector.extract_strided_slice %17 {offsets = [0, 32], sizes = [8, 32], strides = [1, 1]} : vector<8x128xbf16> to vector<8x32xbf16>
    %cst_22 = arith.constant dense<0.000000e+00> : vector<8x8xf32>
    %44 = tpu.matmul %41, %42, %cst_22 {dimension_numbers = #tpu.dot_dimension_numbers<[1], [1], [0], [0], [0, 0, 1, 0], [], []>} : vector<8x32xbf16>, vector<8x32xbf16>, vector<8x8xf32> -> vector<8x8xf32>
    %cst_23 = arith.constant 0.176776692 : f32
    %45 = vector.broadcast %cst_23 : f32 to vector<8x8xf32>
    %46 = arith.mulf %44, %45 : vector<8x8xf32>
    %cst_24 = arith.constant -1.000000e+09 : f32
    %47 = vector.broadcast %cst_24 : f32 to vector<8x8xf32>
    %48 = arith.select %20, %46, %47 : vector<8x8xi1>, vector<8x8xf32>
    %cst_25 = arith.constant dense<0xFF800000> : vector<8xf32>
    %49 = vector.multi_reduction <maximumf>, %48, %cst_25 [1] : vector<8x8xf32> to vector<8xf32>
    %50 = vector.shape_cast %49 : vector<8xf32> to vector<8x1xf32>
    %51 = vector.broadcast %50 : vector<8x1xf32> to vector<8x8xf32>
    %52 = arith.subf %48, %51 : vector<8x8xf32>
    %53 = math.exp %52 : vector<8x8xf32>
    %cst_26 = arith.constant dense<0.000000e+00> : vector<8xf32>
    %54 = vector.multi_reduction <add>, %53, %cst_26 [1] : vector<8x8xf32> to vector<8xf32>
    %55 = vector.shape_cast %54 : vector<8xf32> to vector<8x1xf32>
    %56 = tpu.reciprocal %55 {approx = true} : vector<8x1xf32> -> vector<8x1xf32>
    %57 = vector.broadcast %56 : vector<8x1xf32> to vector<8x8xf32>
    %58 = arith.mulf %53, %57 : vector<8x8xf32>
    %59 = arith.truncf %58 : vector<8x8xf32> to vector<8x8xbf16>
    %cst_27 = arith.constant dense<0.000000e+00> : vector<8x32xf32>
    %60 = tpu.matmul %59, %43, %cst_27 {dimension_numbers = #tpu.dot_dimension_numbers<[1], [0], [0], [1], [0, 0, 1, 1], [], []>} : vector<8x8xbf16>, vector<8x32xbf16>, vector<8x32xf32> -> vector<8x32xf32>
    %61 = vector.extract_strided_slice %9 {offsets = [0, 64], sizes = [8, 32], strides = [1, 1]} : vector<8x128xbf16> to vector<8x32xbf16>
    %62 = vector.extract_strided_slice %13 {offsets = [0, 64], sizes = [8, 32], strides = [1, 1]} : vector<8x128xbf16> to vector<8x32xbf16>
    %63 = vector.extract_strided_slice %17 {offsets = [0, 64], sizes = [8, 32], strides = [1, 1]} : vector<8x128xbf16> to vector<8x32xbf16>
    %cst_28 = arith.constant dense<0.000000e+00> : vector<8x8xf32>
    %64 = tpu.matmul %61, %62, %cst_28 {dimension_numbers = #tpu.dot_dimension_numbers<[1], [1], [0], [0], [0, 0, 1, 0], [], []>} : vector<8x32xbf16>, vector<8x32xbf16>, vector<8x8xf32> -> vector<8x8xf32>
    %cst_29 = arith.constant 0.176776692 : f32
    %65 = vector.broadcast %cst_29 : f32 to vector<8x8xf32>
    %66 = arith.mulf %64, %65 : vector<8x8xf32>
    %cst_30 = arith.constant -1.000000e+09 : f32
    %67 = vector.broadcast %cst_30 : f32 to vector<8x8xf32>
    %68 = arith.select %20, %66, %67 : vector<8x8xi1>, vector<8x8xf32>
    %cst_31 = arith.constant dense<0xFF800000> : vector<8xf32>
    %69 = vector.multi_reduction <maximumf>, %68, %cst_31 [1] : vector<8x8xf32> to vector<8xf32>
    %70 = vector.shape_cast %69 : vector<8xf32> to vector<8x1xf32>
    %71 = vector.broadcast %70 : vector<8x1xf32> to vector<8x8xf32>
    %72 = arith.subf %68, %71 : vector<8x8xf32>
    %73 = math.exp %72 : vector<8x8xf32>
    %cst_32 = arith.constant dense<0.000000e+00> : vector<8xf32>
    %74 = vector.multi_reduction <add>, %73, %cst_32 [1] : vector<8x8xf32> to vector<8xf32>
    %75 = vector.shape_cast %74 : vector<8xf32> to vector<8x1xf32>
    %76 = tpu.reciprocal %75 {approx = true} : vector<8x1xf32> -> vector<8x1xf32>
    %77 = vector.broadcast %76 : vector<8x1xf32> to vector<8x8xf32>
    %78 = arith.mulf %73, %77 : vector<8x8xf32>
    %79 = arith.truncf %78 : vector<8x8xf32> to vector<8x8xbf16>
    %cst_33 = arith.constant dense<0.000000e+00> : vector<8x32xf32>
    %80 = tpu.matmul %79, %63, %cst_33 {dimension_numbers = #tpu.dot_dimension_numbers<[1], [0], [0], [1], [0, 0, 1, 1], [], []>} : vector<8x8xbf16>, vector<8x32xbf16>, vector<8x32xf32> -> vector<8x32xf32>
    %81 = vector.extract_strided_slice %9 {offsets = [0, 96], sizes = [8, 32], strides = [1, 1]} : vector<8x128xbf16> to vector<8x32xbf16>
    %82 = vector.extract_strided_slice %13 {offsets = [0, 96], sizes = [8, 32], strides = [1, 1]} : vector<8x128xbf16> to vector<8x32xbf16>
    %83 = vector.extract_strided_slice %17 {offsets = [0, 96], sizes = [8, 32], strides = [1, 1]} : vector<8x128xbf16> to vector<8x32xbf16>
    %cst_34 = arith.constant dense<0.000000e+00> : vector<8x8xf32>
    %84 = tpu.matmul %81, %82, %cst_34 {dimension_numbers = #tpu.dot_dimension_numbers<[1], [1], [0], [0], [0, 0, 1, 0], [], []>} : vector<8x32xbf16>, vector<8x32xbf16>, vector<8x8xf32> -> vector<8x8xf32>
    %cst_35 = arith.constant 0.176776692 : f32
    %85 = vector.broadcast %cst_35 : f32 to vector<8x8xf32>
    %86 = arith.mulf %84, %85 : vector<8x8xf32>
    %cst_36 = arith.constant -1.000000e+09 : f32
    %87 = vector.broadcast %cst_36 : f32 to vector<8x8xf32>
    %88 = arith.select %20, %86, %87 : vector<8x8xi1>, vector<8x8xf32>
    %cst_37 = arith.constant dense<0xFF800000> : vector<8xf32>
    %89 = vector.multi_reduction <maximumf>, %88, %cst_37 [1] : vector<8x8xf32> to vector<8xf32>
    %90 = vector.shape_cast %89 : vector<8xf32> to vector<8x1xf32>
    %91 = vector.broadcast %90 : vector<8x1xf32> to vector<8x8xf32>
    %92 = arith.subf %88, %91 : vector<8x8xf32>
    %93 = math.exp %92 : vector<8x8xf32>
    %cst_38 = arith.constant dense<0.000000e+00> : vector<8xf32>
    %94 = vector.multi_reduction <add>, %93, %cst_38 [1] : vector<8x8xf32> to vector<8xf32>
    %95 = vector.shape_cast %94 : vector<8xf32> to vector<8x1xf32>
    %96 = tpu.reciprocal %95 {approx = true} : vector<8x1xf32> -> vector<8x1xf32>
    %97 = vector.broadcast %96 : vector<8x1xf32> to vector<8x8xf32>
    %98 = arith.mulf %93, %97 : vector<8x8xf32>
    %99 = arith.truncf %98 : vector<8x8xf32> to vector<8x8xbf16>
    %cst_39 = arith.constant dense<0.000000e+00> : vector<8x32xf32>
    %100 = tpu.matmul %99, %83, %cst_39 {dimension_numbers = #tpu.dot_dimension_numbers<[1], [0], [0], [1], [0, 0, 1, 1], [], []>} : vector<8x8xbf16>, vector<8x32xbf16>, vector<8x32xf32> -> vector<8x32xf32>
    %101 = tpu.concatenate %40, %60, %80, %100 in 1 : vector<8x32xf32>, vector<8x32xf32>, vector<8x32xf32>, vector<8x32xf32> -> vector<8x128xf32>
    %102 = arith.truncf %101 : vector<8x128xf32> to vector<8x128xbf16>
    %c0_40 = arith.constant 0 : index
    %c0_41 = arith.constant 0 : index
    %103 = vector.load %arg7[%c0_40, %c0_41] : memref<128x128xbf16, #tpu.memory_space<vmem>>, vector<128x128xbf16>
    %cst_42 = arith.constant dense<0.000000e+00> : vector<8x128xf32>
    %104 = tpu.matmul %102, %103, %cst_42 {dimension_numbers = #tpu.dot_dimension_numbers<[1], [0], [0], [1], [0, 0, 1, 1], [], []>} : vector<8x128xbf16>, vector<128x128xbf16>, vector<8x128xf32> -> vector<8x128xf32>
    %c0_43 = arith.constant 0 : index
    %c0_44 = arith.constant 0 : index
    %c0_45 = arith.constant 0 : index
    %105 = vector.load %arg8[%c0_43, %c0_44, %c0_45] : memref<1x8x128xf32, #tpu.memory_space<vmem>>, vector<1x8x128xf32>
    %106 = vector.shape_cast %105 : vector<1x8x128xf32> to vector<8x128xf32>
    %107 = vector.shape_cast %104 : vector<8x128xf32> to vector<1x8x128xf32>
    tpu.vector_store %arg8[%c0_43, %c0_44, %c0_45], %107 {strides = array<i32>} : memref<1x8x128xf32, #tpu.memory_space<vmem>>, vector<1x8x128xf32>,
    return
  }
  func.func @transform_0(%arg0: i32) -> (i32, i32, i32) {
    %c0_i32 = arith.constant 0 : i32
    %c0_i32_0 = arith.constant 0 : i32
    %c0_i32_1 = arith.constant 0 : i32
    return %arg0, %c0_i32, %c0_i32_0 : i32, i32, i32
  }
  func.func @transform_1(%arg0: i32) -> (i32, i32, i32) {
    %c0_i32 = arith.constant 0 : i32
    %c0_i32_0 = arith.constant 0 : i32
    %c0_i32_1 = arith.constant 0 : i32
    return %arg0, %c0_i32, %c0_i32_0 : i32, i32, i32
  }
  func.func @transform_2(%arg0: i32) -> (i32, i32, i32) {
    %c0_i32 = arith.constant 0 : i32
    %c0_i32_0 = arith.constant 0 : i32
    %c0_i32_1 = arith.constant 0 : i32
    return %arg0, %c0_i32, %c0_i32_0 : i32, i32, i32
  }
  func.func @transform_3(%arg0: i32) -> (i32, i32) {
    %c0_i32 = arith.constant 0 : i32
    %c0_i32_0 = arith.constant 0 : i32
    %c0_i32_1 = arith.constant 0 : i32
    return %c0_i32, %c0_i32_0 : i32, i32
  }
  func.func @transform_4(%arg0: i32) -> (i32, i32) {
    %c0_i32 = arith.constant 0 : i32
    %c0_i32_0 = arith.constant 0 : i32
    %c0_i32_1 = arith.constant 0 : i32
    return %c0_i32, %c0_i32_0 : i32, i32
  }
  func.func @transform_5(%arg0: i32) -> (i32, i32) {
    %c0_i32 = arith.constant 0 : i32
    %c0_i32_0 = arith.constant 0 : i32
    %c0_i32_1 = arith.constant 0 : i32
    return %c0_i32, %c0_i32_0 : i32, i32
  }
  func.func @transform_6(%arg0: i32) -> (i32, i32) {
    %c0_i32 = arith.constant 0 : i32
    %c0_i32_0 = arith.constant 0 : i32
    %c0_i32_1 = arith.constant 0 : i32
    return %c0_i32, %c0_i32_0 : i32, i32
  }
  func.func @transform_7(%arg0: i32) -> (i32, i32, i32) {
    %c0_i32 = arith.constant 0 : i32
    %c0_i32_0 = arith.constant 0 : i32
    %c0_i32_1 = arith.constant 0 : i32
    return %arg0, %c0_i32, %c0_i32_0 : i32, i32, i32
  }
}

</mosaic_0001>

<bundles_post_ra>
// kernel: tpu_custom_call.1
= control target key start
LH: loop header
LB: loop body
LE: loop exit
PB: predicated region body
PF: predicated region fallthrough
CT: control target
= control target key end

     0   :  { %s2721_s0 = inlined_call_operand.hbm [shape: f32[2,8,128], index: 0, kind: input, shape index: {}]   ;;  %s2722_s1 = inlined_call_operand.hbm [shape: f32[2,8,128], index: 1, kind: input, shape index: {}]   ;;  %s2723_s2 = inlined_call_operand.hbm [shape: f32[2,8,128], index: 2, kind: input, shape index: {}]   ;;  %s2724_s3 = inlined_call_operand.hbm [shape: bf16[128,128], index: 3, kind: input, shape index: {}]   ;;  %s2725_s4 = inlined_call_operand.hbm [shape: bf16[128,128], index: 4, kind: input, shape index: {}]   ;;  %s2726_s5 = inlined_call_operand.hbm [shape: bf16[128,128], index: 5, kind: input, shape index: {}]   ;;  %s2727_s6 = inlined_call_operand.hbm [shape: bf16[128,128], index: 6, kind: input, shape index: {}]   ;;  %s2728_s7 = inlined_call_operand.hbm [shape: f32[2,8,128], index: 7, kind: output, shape index: {}]  }
   0x1   :  { %2752 = sst [smem:[#allocation25_spill]] %s2722_s1 }
   0x2   :  { %2753 = sst [smem:[#allocation26_spill]] %s2724_s3 }
   0x3   :  { %2754 = sst [smem:[#allocation27_spill]] %s2726_s5 }
   0x4   :  { %2755 = sst [smem:[#allocation28_spill]] %s2728_s7 }
   0x5   :  { %12 = vsyncpa [#allocation3], 0 }
   0x6   :  { %14 = vsyncpa [#allocation3 + $0x1], 0 }
   0x7   :  { %15 = vsyncpa [#allocation6], 0 }
   0x8   :  { %17 = vsyncpa [#allocation6 + $0x1], 0 }
   0x9   :  { %18 = vsyncpa [#allocation9], 0 }
   0xa   :  { %19 = vsyncpa [#allocation12], 0 }
   0xb   :  { %20 = vsyncpa [#allocation4], 0 }
   0xc   :  { %22 = vsyncpa [#allocation4 + $0x1], 0  ;;  %s2221_s24 = smov 0   ;;  %s2223_s25 = smov 0  }
   0xd   :  { %s2225_s26 = smov 0   ;;  %s2227_s27 = smov 0  }
   0xe LB: > { %2756 = sst [smem:[#allocation20_spill]] %s2152_s24  ;;  %s2166_s28 = smov [#allocation8]   ;;  %s2164_s27 = sphi %s2227_s27, %s2793_s27   ;;  %s2160_s26 = sphi %s2225_s26, %s2797_s26   ;;  %s2156_s25 = sphi %s2223_s25, %s2796_s25   ;;  %s2152_s24 = sphi %s2221_s24, %s2795_s24  }
   0xf   : > { %2757 = sst [smem:[#allocation21_spill]] %s2164_s27  ;;  %s233_s29 = sshll.u32 %s2166_s28, 4  ;;  %s2247_s29 = int_to_ptr.vmem [resolvable:$true] %s233_s29 }
  0x10   : > { %s2242_s30 = sadd.s32 4294967295, %s2164_s27   ;;  %p1487_p0 = scmp.ge.s32.totalorder %s2164_s27, 1 }
  0x11   : > { %p2738_p1 = scmp.eq.s32.totalorder %s2242_s30, 0  ;;  %p221_p2 = scmp.lt.s32.totalorder %s2164_s27, 3 }
  0x12   : > { %s2167_s9 = smov [#allocation11]   ;;  %s2760_s3 = sld [smem:[#allocation26_spill]] }
  0x13   : > { %p2249_p3 = pnand %p1487_p0, %p221_p2  ;;  %s259_s10 = sshll.u32 %s2167_s9, 4  ;;  %s2262_s10 = int_to_ptr.vmem [resolvable:$true] %s259_s10 }
  0x15   : > { %s2758_s8 = scalar_select %p2249_p3, 1, 0 }
  0x16   : > { %p1756_p5 = pneg %p2249_p3 }
  0x18   : > { %p2258_p6 = pnand %p1756_p5, %p2738_p1  ;;  %s1884_s14 = scalar_lea.hbm %s2760_s3, 1024 }
  0x19   : > { %p1885_p7 = scmp.ne.s32.totalorder %s2760_s3, %s1884_s14  ;;  %p1891_p11 = scmp.lt.u32.totalorder %s1884_s14, %s2760_s3 }
  0x1a   : > { %s2759_s11 = scalar_select %p2258_p6, 1, 0 }
  0x1b   : > { %p2272_p8 = pneg %p2258_p6 }
  0x1d   : > { %s2761_s17 = scalar_select %p2272_p8, 1, 0 }
  0x1e   : > { %p1887_p9 = pnand %p2272_p8, %p1885_p7 }
  0x20   : > { %p1888_p10 = pneg %p1887_p9 }
  0x22   : > { %p1893_p12 = pnand %p1891_p11, %p1888_p10 }
  0x24   : > { %1896 = shalt.err (!%p1893_p12)
}
  0x25   : > { %s1897_s20 = scalar_lea.vmem %s2247_s29, 1024  ;;  %p1905_p5 = scmp.lt.s32.totalorder %s2247_s29, %s2247_s29 }
  0x26   : > { %p1898_p13 = scmp.ne.s32.totalorder %s2247_s29, %s1897_s20  ;;  %p1906_p4 = scmp.lt.s32.totalorder %s1897_s20, %s1897_s20 }
  0x28   : > { %p1900_p0 = pnand %p1898_p13, %p2272_p8  ;;  %p1907_p7 = por %p1906_p4, %p1905_p5 }
  0x2a   : > { %p1901_p2 = pneg %p1900_p0 }
  0x2c   : > { %p1908_p9 = pnand %p1907_p7, %p1901_p2 }
  0x2e   : > { %1911 = shalt.err (!%p1908_p9)
}
  0x2f   : > { %s2731_s21 = smov 64   ;;  %s2733_s22 = smov 4  }
  0x30   : > { %1759 = dma.hbm_to_vmem [thread:$0]  (!%p2258_p6), %s2760_s3, 1024, %s2247_s29, [#allocation9], %s2731_s21, %s2731_s21, %s2733_s22  }
  0x31   : > { %s2762_s5 = sld [smem:[#allocation27_spill]] }
  0x37   : > { %s1912_s13 = scalar_lea.hbm %s2762_s5, 1024 }
  0x38   : > { %p1913_p4 = scmp.ne.s32.totalorder %s2762_s5, %s1912_s13  ;;  %p1919_p12 = scmp.lt.u32.totalorder %s1912_s13, %s2762_s5 }
  0x3a   : > { %p1915_p10 = pnand %p1913_p4, %p2272_p8 }
  0x3c   : > { %p1916_p11 = pneg %p1915_p10 }
  0x3e   : > { %p1921_p13 = pnand %p1919_p12, %p1916_p11 }
  0x40   : > { %1924 = shalt.err (!%p1921_p13)
}
  0x41   : > { %s1925_s29 = scalar_lea.vmem %s2262_s10, 1024  ;;  %p1933_p7 = scmp.lt.s32.totalorder %s2262_s10, %s2262_s10 }
  0x42   : > { %p1926_p0 = scmp.ne.s32.totalorder %s2262_s10, %s1925_s29  ;;  %p1934_p9 = scmp.lt.s32.totalorder %s1925_s29, %s1925_s29 }
  0x44   : > { %p1928_p2 = pnand %p1926_p0, %p2272_p8  ;;  %p1935_p4 = por %p1934_p9, %p1933_p7 }
  0x46   : > { %p1929_p5 = pneg %p1928_p2 }
  0x48   : > { %p1936_p10 = pnand %p1935_p4, %p1929_p5 }
  0x4a   : > { %1939 = shalt.err (!%p1936_p10)
}
  0x4b   : > { %1765 = dma.hbm_to_vmem [thread:$0]  (!%p2258_p6), %s2762_s5, 1024, %s2262_s10, [#allocation12], %s2731_s21, %s2731_s21, %s2733_s22  }
  0x4c   : > { %s1486_s23 = sadd.s32 4294967294, %s2164_s27   ;;  %s2324_s28 = sadd.s32 1, %s2164_s27  }
  0x4d   : > { %2763 = sst [smem:[#allocation22_spill]] %s2324_s28  ;;  %s32_s9 = ssub.s32 %s2164_s27, %s2324_s28 }
  0x4e   : > { %s35_s12 = sadd.s32 1, %s2160_s26  ;;  %p33_p11 = scmp.eq.s32.totalorder %s32_s9, 0 }
  0x4f   : > { %p42_p12 = scmp.ne.s32.totalorder %s2160_s26, %s2156_s25  ;;  %p43_p13 = scmp.eq.s32.totalorder %s2164_s27, 0 }
  0x50   : > { %p48_p0 = scmp.ne.s32.totalorder %s2156_s25, %s2152_s24  ;;  %p208_p7 = scmp.eq.s32.totalorder %s2242_s30, 1 }
  0x51   : > { %s2335_s13 = scalar_select %p33_p11, %s2160_s26, %s35_s12  }
  0x52   : > { %p44_p2 = por %p43_p13, %p42_p12  ;;  %p2339_p5 = por %p2738_p1, %p48_p0 }
  0x53   : > { %2764 = sst [smem:[#allocation23_spill]] %s2335_s13  ;;  %p214_p9 = scmp.eq.s32.totalorder %s1486_s23, 1 }
  0x54   : > { %s2765_s14 = scalar_select %p2339_p5, 1, 0 }
  0x55   : > { %p1787_p4 = scmp.lt.s32.totalorder %s2164_s27, 2  ;;  %s2730_s10 = sand.u32 1, %s2160_s26  }
  0x56   : > { %p2346_p10 = por %p208_p7, %p42_p12  ;;  %p2350_p3 = por %p214_p9, %p48_p0 }
  0x57   : > { %s2356_s18 = sshll.u32 %s2730_s10, 3  ;;  %s2359_s29 = sshll.u32 %s2164_s27, 7 }
  0x58   : > { %s2766_s15 = scalar_select %p2346_p10, 1, 0 }
  0x59   : > { %s2767_s16 = scalar_select %p2350_p3, 1, 0 }
  0x5a   : > { %p2361_p11 = pnand %p1787_p4, %p44_p2  ;;  %s304_s20 = sand.u32 1, %s2164_s27  }
  0x5b   : > { %2768 = sst [smem:[#allocation24_spill]] %s2767_s16  ;;  %s308_s10 = scalar_lea.vmem [#allocation5], %s2356_s18 }
  0x5c   : > { %s2769_s19 = scalar_select %p2361_p11, 1, 0 }
  0x5d   : > { %s2770_s1 = sld [smem:[#allocation25_spill]]  ;;  %s315_s21 = sshll.u32 %s308_s10, 4  ;;  %s2373_s21 = int_to_ptr.vmem [resolvable:$true] %s315_s21 }
  0x5e   : > { %s2170_s22 = smov [#allocation10]   ;;  %s2377_s5 = scalar_lea.sflag [#allocation6], %s304_s20 }
  0x5f   : > { %s2375_s3 = sshll.u32 %s2170_s22, 4  ;;  %p2383_p13 = pneg %p2361_p11  ;;  %s247_s3 = int_to_ptr.vmem [resolvable:$true] %s2375_s3 }
  0x61   : > { %s2771_s23 = scalar_select %p2383_p13, 1, 0 }
  0x63   : > { %s2370_s12 = scalar_lea.hbm %s2770_s1, %s2359_s29  ;;  %s1945_s28 = scalar_lea.hbm %s2770_s1, 256 }
  0x64   : > { %s1940_s13 = scalar_lea.hbm %s2370_s12, 128  ;;  %p1946_p7 = scmp.lt.u32.totalorder %s2370_s12, %s2770_s1 }
  0x65   : > { %p1941_p12 = scmp.ne.s32.totalorder %s2370_s12, %s1940_s13  ;;  %p1947_p9 = scmp.lt.u32.totalorder %s1945_s28, %s1940_s13 }
  0x66   : > { %p1949_p1 = scmp.lt.u32.totalorder %s1940_s13, %s2370_s12 }
  0x67   : > { %p1943_p0 = pnand %p2383_p13, %p1941_p12  ;;  %p1948_p4 = por %p1947_p9, %p1946_p7 }
  0x69   : > { %p1944_p2 = pneg %p1943_p0  ;;  %p1950_p3 = por %p1949_p1, %p1948_p4 }
  0x6b   : > { %p1951_p10 = pnand %p1950_p3, %p1944_p2 }
  0x6d   : > { %1954 = shalt.err (!%p1951_p10)
}
  0x6e   : > { %s1955_s20 = scalar_lea.vmem %s2373_s21, 128  ;;  %s2171_s9 = smov [#allocation5]  }
  0x6f   : > { %p1956_p12 = scmp.ne.s32.totalorder %s2373_s21, %s1955_s20  ;;  %s1960_s10 = sshll.u32 %s2171_s9, 4  ;;  %s1961_s10 = int_to_ptr.vmem [resolvable:$false] %s1960_s10 }
  0x70   : > { %s1962_s27 = scalar_lea.vmem %s1961_s10, 256  ;;  %p1963_p6 = scmp.lt.s32.totalorder %s2373_s21, %s1961_s10 }
  0x71   : > { %p1958_p0 = pnand %p1956_p12, %p2383_p13  ;;  %p1964_p8 = scmp.lt.s32.totalorder %s1962_s27, %s1955_s20 }
  0x73   : > { %p1959_p5 = pneg %p1958_p0  ;;  %p1965_p7 = por %p1964_p8, %p1963_p6 }
  0x75   : > { %p1966_p9 = pnand %p1965_p7, %p1959_p5 }
  0x77   : > { %1969 = shalt.err (!%p1966_p9)
}
  0x78   : > { %1775 = dma.hbm_to_vmem [thread:$0]  (!%p2361_p11), %s2370_s12, 128, %s2373_s21, %s2377_s5  }
  0x79   : > { %s1970_s22 = scalar_lea.hbm %s2725_s4, 1024  ;;  %p2772_p3 = scmp.ne.s32.totalorder %s2761_s17, 0 }
  0x7a   : > { %p1971_p1 = scmp.ne.s32.totalorder %s2725_s4, %s1970_s22  ;;  %p1977_p5 = scmp.lt.u32.totalorder %s1970_s22, %s2725_s4 }
  0x7c   : > { %p1973_p6 = pnand %p1971_p1, %p2772_p3 }
  0x7e   : > { %p1974_p8 = pneg %p1973_p6 }
  0x80   : > { %p1979_p10 = pnand %p1977_p5, %p1974_p8 }
  0x82   : > { %1982 = shalt.err (!%p1979_p10)
}
  0x83   : > { %s1983_s27 = scalar_lea.vmem %s247_s3, 1024  ;;  %p1991_p0 = scmp.lt.s32.totalorder %s247_s3, %s247_s3 }
  0x84   : > { %p1984_p2 = scmp.ne.s32.totalorder %s247_s3, %s1983_s27  ;;  %p1992_p7 = scmp.lt.s32.totalorder %s1983_s27, %s1983_s27 }
  0x86   : > { %p1986_p4 = pnand %p1984_p2, %p2772_p3  ;;  %p1993_p9 = por %p1992_p7, %p1991_p0 }
  0x88   : > { %p1987_p12 = pneg %p1986_p4 }
  0x8a   : > { %p1994_p11 = pnand %p1993_p9, %p1987_p12 }
  0x8c   : > { %1997 = shalt.err (!%p1994_p11)
}
  0x8d   : > { %p2773_p1 = scmp.ne.s32.totalorder %s2759_s11, 0  ;;  %s2774_s1 = smov 4  }
  0x8e   : > { %s2775_s21 = smov 64   ;;  %s2172_s13 = smov [#allocation13]  }
  0x8f   : > { %1762 = dma.hbm_to_vmem [thread:$0]  (!%p2773_p1), %s2725_s4, 1024, %s247_s3, [#allocation9], %s2775_s21, %s2775_s21, %s2774_s1  }
  0x90   : > { %s272_s22 = sshll.u32 %s2172_s13, 4  ;;  %s1998_s10 = scalar_lea.hbm %s2727_s6, 1024  ;;  %s273_s22 = int_to_ptr.vmem [resolvable:$true] %s272_s22 }
  0x91   : > { %p1999_p11 = scmp.ne.s32.totalorder %s2727_s6, %s1998_s10  ;;  %p2005_p5 = scmp.lt.u32.totalorder %s1998_s10, %s2727_s6 }
  0x93   : > { %p2001_p6 = pnand %p1999_p11, %p2772_p3 }
  0x95   : > { %p2002_p8 = pneg %p2001_p6 }
  0x97   : > { %p2007_p10 = pnand %p2005_p5, %p2002_p8 }
  0x99   : > { %2010 = shalt.err (!%p2007_p10)
}
  0x9a   : > { %s2011_s3 = scalar_lea.vmem %s273_s22, 1024  ;;  %p2019_p0 = scmp.lt.s32.totalorder %s273_s22, %s273_s22 }
  0x9b   : > { %p2012_p2 = scmp.ne.s32.totalorder %s273_s22, %s2011_s3  ;;  %p2020_p7 = scmp.lt.s32.totalorder %s2011_s3, %s2011_s3 }
  0x9d   : > { %p2014_p4 = pnand %p2012_p2, %p2772_p3  ;;  %p2021_p9 = por %p2020_p7, %p2019_p0 }
  0x9f   : > { %p2015_p12 = pneg %p2014_p4 }
  0xa1   : > { %p2022_p13 = pnand %p2021_p9, %p2015_p12 }
  0xa3   : > { %2025 = shalt.err (!%p2022_p13)
}
  0xa4   : > { %1768 = dma.hbm_to_vmem [thread:$0]  (!%p2773_p1), %s2727_s6, 1024, %s273_s22, [#allocation12], %s2775_s21, %s2775_s21, %s2774_s1  }
  0xa5   : > { %s2454_s12 = scalar_lea.hbm %s2721_s0, %s2359_s29  ;;  %s290_s11 = scalar_lea.vmem [#allocation2], %s2356_s18 }
  0xa6   : > { %s297_s28 = sshll.u32 %s290_s11, 4  ;;  %s2776_s13 = sand.u32 1, %s2160_s26   ;;  %s298_s28 = int_to_ptr.vmem [resolvable:$true] %s297_s28 }
  0xa7   : > { %s287_s9 = scalar_lea.sflag [#allocation3], %s2776_s13  ;;  %s2026_s20 = scalar_lea.hbm %s2454_s12, 128 }
  0xa8   : > { %p2027_p13 = scmp.ne.s32.totalorder %s2454_s12, %s2026_s20  ;;  %p2777_p3 = scmp.ne.s32.totalorder %s2771_s23, 0 }
  0xa9   : > { %s2031_s22 = scalar_lea.hbm %s2721_s0, 256  ;;  %p2032_p1 = scmp.lt.u32.totalorder %s2454_s12, %s2721_s0 }
  0xaa   : > { %p2029_p11 = pnand %p2027_p13, %p2777_p3  ;;  %p2033_p8 = scmp.lt.u32.totalorder %s2031_s22, %s2026_s20 }
  0xab   : > { %p2035_p10 = scmp.lt.u32.totalorder %s2026_s20, %s2454_s12 }
  0xac   : > { %p2030_p6 = pneg %p2029_p11  ;;  %p2034_p5 = por %p2033_p8, %p2032_p1 }
  0xae   : > { %p2036_p2 = por %p2035_p10, %p2034_p5 }
  0xb0   : > { %p2037_p4 = pnand %p2036_p2, %p2030_p6 }
  0xb2   : > { %2040 = shalt.err (!%p2037_p4)
}
  0xb3   : > { %s2041_s3 = scalar_lea.vmem %s298_s28, 128  ;;  %s2173_s7 = smov [#allocation2]  }
  0xb4   : > { %p2042_p12 = scmp.ne.s32.totalorder %s298_s28, %s2041_s3  ;;  %s2046_s24 = sshll.u32 %s2173_s7, 4  ;;  %s2047_s24 = int_to_ptr.vmem [resolvable:$false] %s2046_s24 }
  0xb5   : > { %s2048_s17 = scalar_lea.vmem %s2047_s24, 256  ;;  %p2049_p9 = scmp.lt.s32.totalorder %s298_s28, %s2047_s24 }
  0xb6   : > { %p2044_p0 = pnand %p2042_p12, %p2777_p3  ;;  %p2050_p13 = scmp.lt.s32.totalorder %s2048_s17, %s2041_s3 }
  0xb8   : > { %p2045_p7 = pneg %p2044_p0  ;;  %p2051_p11 = por %p2050_p13, %p2049_p9 }
  0xba   : > { %p2052_p1 = pnand %p2051_p11, %p2045_p7 }
  0xbc   : > { %2055 = shalt.err (!%p2052_p1)
}
  0xbd   : > { %p2778_p8 = scmp.ne.s32.totalorder %s2769_s19, 0  ;;  %s2480_s13 = scalar_lea.hbm %s2723_s2, %s2359_s29 }
  0xbe   : > { %s326_s20 = scalar_lea.vmem [#allocation7], %s2356_s18  ;;  %s2056_s21 = scalar_lea.hbm %s2480_s13, 128 }
  0xbf   : > { %1772 = dma.hbm_to_vmem [thread:$0]  (!%p2778_p8), %s2454_s12, 128, %s298_s28, %s287_s9  }
  0xc0   : > { %s333_s1 = sshll.u32 %s326_s20, 4  ;;  %p2057_p6 = scmp.ne.s32.totalorder %s2480_s13, %s2056_s21  ;;  %s334_s1 = int_to_ptr.vmem [resolvable:$true] %s333_s1 }
  0xc1   : > { %s2061_s12 = scalar_lea.hbm %s2723_s2, 256  ;;  %p2062_p2 = scmp.lt.u32.totalorder %s2480_s13, %s2723_s2 }
  0xc2   : > { %p2059_p5 = pnand %p2057_p6, %p2777_p3  ;;  %p2063_p4 = scmp.lt.u32.totalorder %s2061_s12, %s2056_s21 }
  0xc3   : > { %p2065_p0 = scmp.lt.u32.totalorder %s2056_s21, %s2480_s13 }
  0xc4   : > { %p2060_p10 = pneg %p2059_p5  ;;  %p2064_p12 = por %p2063_p4, %p2062_p2 }
  0xc6   : > { %p2066_p7 = por %p2065_p0, %p2064_p12 }
  0xc8   : > { %p2067_p9 = pnand %p2066_p7, %p2060_p10 }
  0xca   : > { %2070 = shalt.err (!%p2067_p9)
}
  0xcb   : > { %s2071_s18 = scalar_lea.vmem %s334_s1, 128  ;;  %s2174_s29 = smov [#allocation7]  }
  0xcc   : > { %p2072_p13 = scmp.ne.s32.totalorder %s334_s1, %s2071_s18  ;;  %s2076_s27 = sshll.u32 %s2174_s29, 4  ;;  %s2077_s27 = int_to_ptr.vmem [resolvable:$false] %s2076_s27 }
  0xcd   : > { %s2078_s3 = scalar_lea.vmem %s2077_s27, 256  ;;  %p2079_p6 = scmp.lt.s32.totalorder %s334_s1, %s2077_s27 }
  0xce   : > { %p2074_p11 = pnand %p2072_p13, %p2777_p3  ;;  %p2080_p5 = scmp.lt.s32.totalorder %s2078_s3, %s2071_s18 }
  0xd0   : > { %p2075_p1 = pneg %p2074_p11  ;;  %p2081_p8 = por %p2080_p5, %p2079_p6 }
  0xd2   : > { %p2082_p2 = pnand %p2081_p8, %p2075_p1 }
  0xd4   : > { %2085 = shalt.err (!%p2082_p2)
}
  0xd5   : > { %p2779_p4 = scmp.ne.s32.totalorder %s2769_s19, 0  ;;  %p2780_p10 = scmp.ne.s32.totalorder %s2758_s8, 0 }
  0xd6   : > { %s2504_s23 = sand.u32 (!%p2780_p10), 1, %s2156_s25   ;;  %p2781_p3 = scmp.ne.s32.totalorder (!%p2780_p10), %s2765_s14, 0 }
  0xd7   : > { %1778 = dma.hbm_to_vmem [thread:$0]  (!%p2779_p4), %s2480_s13, 128, %s334_s1, %s2377_s5  }
  0xd8   : > { %342 = sbr.rel (%p2780_p10) target bundleno = 3194 (0xc7a), region = 48  ;;  %s2507_s7 = sshll.u32 (!%p2780_p10), %s2504_s23, 3 }
  0xd9   : > { %s345_s24 = scalar_lea.sflag (!%p2780_p10), [#allocation3], %s2504_s23  ;;  %s348_s17 = scalar_lea.vmem (!%p2780_p10), [#allocation2], %s2507_s7 }
  0xdf   : > { %2131 = dma.done.wait (%p2781_p3), %s345_s24, 128  }
  0xe0   : > { %2133 = vsyncadd (%p2781_p3), %s345_s24, 4294967168  ;;  %s353_s5 = sand.u32 1, %s2242_s30   ;;  %s357_s19 = scalar_lea.vmem [#allocation5], %s2507_s7 }
  0xe1   : > { %s354_s8 = scalar_lea.sflag [#allocation6], %s353_s5 }
  0xe2   : > { %2135 = dma.done.wait (%p2781_p3), %s354_s8, 256  }
  0xe3   : > { %2137 = vsyncadd (%p2781_p3), %s354_s8, 4294967040  ;;  %s366_s16 = scalar_lea.vmem [#allocation7], %s2507_s7  ;;  %p2782_p8 = scmp.eq.s32.totalorder %s2242_s30, 0 }
  0xe5   : > { %2139 = dma.done.wait (%p2782_p8), [#allocation9], 2048   ;;  %p2783_p12 = pmov %p2782_p8 }
  0xe6   : > { %p2784_p0 = pmov %p2782_p8 }
  0xe7   : > { %2141 = vsyncadd (%p2783_p12), [#allocation9], 4294965248 }
  0xe8   : > { %2143 = dma.done.wait (%p2784_p0), [#allocation12], 2048   ;;  %p2785_p7 = pmov %p2784_p0 }
  0xe9   : > { %v2175_v0 = vmov 0.0   ;;  %vm2176_vm0 = vmmov 0   ;;  %v1836_v1 = vld [vmem:[#allocation10] sm:$0xff]   ;;  %v1837_v2 = vld [vmem:[#allocation10 + $0x8] sm:$0xff]   ;;  %v1839_v5 = vld [vmem:[#allocation10 + $0x10] sm:$0xff]   ;;  %vm750_vm1 = vcmask 261120   ;;  %v745_v42 = vlaneseq }
  0xea   : > { %2145 = vsyncadd (%p2785_p7), [#allocation12], 4294965248  ;;  %1624 = vmatprep.subr.bf16.mxu1 %v2175_v0  ;;  %1604 = vmatprep.subr.bf16.mxu0 %v2175_v0  ;;  %v1838_v3 = vld [vmem:[#allocation8] sm:$0xff]   ;;  %v1840_v4 = vld [vmem:[#allocation8 + $0x8] sm:$0xff]   ;;  %s2177_s14 = smov 96   ;;  %vm799_vm3 = vcmask 64512  }
  0xeb   : > { %1640 = vmatprep.mubr.msk.bf16.mxu1 %vm2176_vm0, %v2175_v0  ;;  %1620 = vmatprep.mubr.msk.bf16.mxu0 %vm2176_vm0, %v2175_v0  ;;  %v1842_v6 = vld [vmem:[#allocation8 + $0x10] sm:$0xff]   ;;  %v1841_v7 = vld [vmem:[#allocation10 + $0x18] sm:$0xff]   ;;  %v1843_v9 = vld [vmem:[#allocation10 + $0x20] sm:$0xff]   ;;  %v2587_v43 = vshrl.u32 %v745_v42, 7  ;;  %v2589_v44 = vand.u32 127, %v745_v42  ;;  %vm815_vm4 = vcmask 1043456  }
  0xec   : > { %1625 = vmatpush3.bf16.msra.mxu1 %v1836_v1  ;;  %1605 = vmatpush3.bf16.msra.mxu0 %v1838_v3  ;;  %v1844_v8 = vld [vmem:[#allocation8 + $0x18] sm:$0xff]   ;;  %v1845_v10 = vld [vmem:[#allocation10 + $0x28] sm:$0xff]   ;;  %v1846_v11 = vld [vmem:[#allocation8 + $0x20] sm:$0xff]   ;;  %s2178_s11 = smov 64   ;;  %s2179_s13 = smov 32   ;;  %vm1211_vm5 = vcmask 523264  }
  0xed   : > { %1626 = vmatprep.subr.bf16.mxu1 %v2175_v0  ;;  %1606 = vmatprep.subr.bf16.mxu0 %v2175_v0  ;;  %v1848_v12 = vld [vmem:[#allocation8 + $0x28] sm:$0xff]   ;;  %v1847_v13 = vld [vmem:[#allocation10 + $0x30] sm:$0xff]   ;;  %v1849_v15 = vld [vmem:[#allocation10 + $0x38] sm:$0xff]   ;;  %vm749_vm2 = vcmp.le.s32.totalorder %v2589_v44, %v2587_v43  ;;  %vm1213_vm6 = vcmask 785408   ;;  %s422_s20 = scalar_lea.vmem [#allocation14], %s2507_s7  ;;  %s1549_s21 = sshll.u32 %s2242_s30, 7 }
  0xee   : > { %v1850_v14 = vld [vmem:[#allocation8 + $0x30] sm:$0xff]   ;;  %v425_v16 = vld [vmem:[%s357_s19] sm:$0xff]  ;;  %v1851_v17 = vld [vmem:[#allocation8 + $0x38] sm:$0xff]   ;;  %s1335_s1 = sshll.u32 %s422_s20, 4  ;;  %s2786_s12 = sld [smem:[#allocation28_spill]]  ;;  %s2674_s1 = int_to_ptr.vmem [resolvable:$true] %s1335_s1 }
  0xef   : > { %v424_v18 = vld [vmem:[%s348_s17] sm:$0xff]  ;;  %v533_v19 = vpack.c.bf16 %v425_v16, %v425_v16  ;;  %v1852_v32 = vld [vmem:[#allocation11] sm:$0xff]   ;;  %v1853_v33 = vld [vmem:[#allocation11 + $0x8] sm:$0xff]   ;;  %s1322_s9 = scalar_lea.sflag [#allocation4], %s2504_s23  ;;  %s2086_s18 = scalar_lea.vmem %s2674_s1, 128 }
  0xf0   : > { %1627 = vmatpush3.bf16.msra.mxu1 %v1837_v2  ;;  %1607 = vmatpush3.bf16.msra.mxu0 %v1840_v4  ;;  %v427_v20 = vpack.c.bf16 %v424_v18, %v424_v18  ;;  %v1854_v34 = vld [vmem:[#allocation11 + $0x10] sm:$0xff]   ;;  %v1855_v35 = vld [vmem:[#allocation11 + $0x18] sm:$0xff]   ;;  %v1856_v36 = vld [vmem:[#allocation11 + $0x20] sm:$0xff]   ;;  %p2087_p9 = scmp.ne.s32.totalorder %s2674_s1, %s2086_s18  ;;  %p2787_p13 = scmp.ne.s32.totalorder %s2766_s15, 0 }
  0xf1   : > { %1628 = vmatprep.subr.bf16.mxu1 %v2175_v0  ;;  %1608 = vmatprep.subr.bf16.mxu0 %v2175_v0  ;;  %v1857_v37 = vld [vmem:[#allocation11 + $0x28] sm:$0xff]   ;;  %v1858_v38 = vld [vmem:[#allocation11 + $0x30] sm:$0xff]   ;;  %v1859_v39 = vld [vmem:[#allocation11 + $0x38] sm:$0xff]   ;;  %s2180_s30 = smov [#allocation14]  }
  0xf2   : > { %v426_v40 = vld [vmem:[%s366_s16] sm:$0xff]  ;;  %p2088_p11 = pnand %p2087_p9, %p2787_p13  ;;  %s2090_s29 = sshll.u32 %s2180_s30, 4  ;;  %s2091_s29 = int_to_ptr.vmem [resolvable:$false] %s2090_s29 }
  0xf3   : > { %v639_v41 = vpack.c.bf16 %v426_v40, %v426_v40  ;;  %s2092_s27 = scalar_lea.vmem %s2091_s29, 256  ;;  %p2093_p6 = scmp.lt.s32.totalorder %s2674_s1, %s2091_s29 }
  0xf4   : > { %1629 = vmatpush3.bf16.msra.mxu1 %v1839_v5  ;;  %1609 = vmatpush3.bf16.msra.mxu0 %v1842_v6  ;;  %s2679_s28 = scalar_lea.hbm %s2786_s12, %s1549_s21  ;;  %p2089_p1 = pneg %p2088_p11 }
  0xf5   : > { %1630 = vmatprep.subr.bf16.mxu1 %v2175_v0  ;;  %1610 = vmatprep.subr.bf16.mxu0 %v2175_v0  ;;  %p2094_p5 = scmp.lt.s32.totalorder %s2092_s27, %s2086_s18 }
  0xf7   : > { %p2095_p2 = por %p2094_p5, %p2093_p6 }
  0xf8   : > { %1631 = vmatpush3.bf16.msra.mxu1 %v1841_v7  ;;  %1611 = vmatpush3.bf16.msra.mxu0 %v1844_v8 }
  0xf9   : > { %1632 = vmatprep.subr.bf16.mxu1 %v2175_v0  ;;  %1612 = vmatprep.subr.bf16.mxu0 %v2175_v0  ;;  %p2096_p4 = pnand %p2095_p2, %p2089_p1 }
  0xfc   : > { %1633 = vmatpush3.bf16.msra.mxu1 %v1843_v9  ;;  %1613 = vmatpush3.bf16.msra.mxu0 %v1846_v11 }
  0xfd   : > { %1634 = vmatprep.subr.bf16.mxu1 %v2175_v0  ;;  %1614 = vmatprep.subr.bf16.mxu0 %v2175_v0 }
 0x100   : > { %1635 = vmatpush3.bf16.msra.mxu1 %v1845_v10  ;;  %1615 = vmatpush3.bf16.msra.mxu0 %v1848_v12 }
 0x101   : > { %1636 = vmatprep.subr.bf16.mxu1 %v2175_v0  ;;  %1616 = vmatprep.subr.bf16.mxu0 %v2175_v0 }
 0x104   : > { %1637 = vmatpush3.bf16.msra.mxu1 %v1847_v13  ;;  %1617 = vmatpush3.bf16.msra.mxu0 %v1850_v14 }
 0x105   : > { %1638 = vmatprep.subr.bf16.mxu1 %v2175_v0  ;;  %1618 = vmatprep.subr.bf16.mxu0 %v2175_v0 }
 0x108   : > { %1639 = vmatpush3.bf16.msra.mxu1 %v1849_v15  ;;  %1619 = vmatpush3.bf16.msra.mxu0 %v1851_v17 }
 0x109   : > { %1664 = vmatprep.subr.bf16.mxu1 %v2175_v0  ;;  %1644 = vmatprep.subr.bf16.mxu0 %v2175_v0 }
 0x10b   : > { %1641 = vmatmul.mubr.bf16.vlgmr.msra.gmra.mrb[0].mxu1 %v533_v19  ;;  %1621 = vmatmul.mubr.bf16.vlgmr.msra.gmra.mrb[0].mxu0 %v427_v20 }
 0x10c   : > { %1666 = vmatprep.mubr.msk.bf16.mxu1 %vm2176_vm0, %v2175_v0  ;;  %1660 = vmatprep.mubr.msk.bf16.mxu0 %vm2176_vm0, %v2175_v0 }
 0x10d   : > { %1645 = vmatpush3.bf16.msra.mxu0 %v1852_v32 }
 0x10e   : > { %1646 = vmatprep.subr.bf16.mxu0 %v2175_v0 }
 0x111   : > { %1647 = vmatpush3.bf16.msra.mxu0 %v1853_v33 }
 0x112   : > { %1648 = vmatprep.subr.bf16.mxu0 %v2175_v0 }
 0x115   : > { %1649 = vmatpush3.bf16.msra.mxu0 %v1854_v34 }
 0x116   : > { %1650 = vmatprep.subr.bf16.mxu0 %v2175_v0 }
 0x119   : > { %1651 = vmatpush3.bf16.msra.mxu0 %v1855_v35 }
 0x11a   : > { %1652 = vmatprep.subr.bf16.mxu0 %v2175_v0 }
 0x11d   : > { %1653 = vmatpush3.bf16.msra.mxu0 %v1856_v36 }
 0x11e   : > { %1654 = vmatprep.subr.bf16.mxu0 %v2175_v0 }
 0x121   : > { %1655 = vmatpush3.bf16.msra.mxu0 %v1857_v37 }
 0x122   : > { %1656 = vmatprep.subr.bf16.mxu0 %v2175_v0 }
 0x125   : > { %1657 = vmatpush3.bf16.msra.mxu0 %v1858_v38 }
 0x126   : > { %1658 = vmatprep.subr.bf16.mxu0 %v2175_v0 }
 0x129   : > { %1659 = vmatpush3.bf16.msra.mxu0 %v1859_v39 }
 0x12a   : > { %1712 = vmatprep.subr.bf16.mxu0 %v2175_v0 }
 0x12c   : > { %1661 = vmatmul.mubr.bf16.vlgmr.msra.gmra.mrb[4].mxu0 %v639_v41 }
 0x12d   : > { %1728 = vmatprep.mubr.msk.bf16.mxu0 %vm2176_vm0, %v2175_v0 }
 0x1de   : > { %v632_v21 = vpop.f32.mrb[0].mxu1  ;;  %v526_v25 = vpop.f32.mrb[0].mxu0 }
 0x1df   : > { %v2560_v22 = vpack.c.bf16 %v632_v21, %v632_v21  ;;  %v1642_v23 = vpop.f32.mrb[1].mxu1  ;;  %v2566_v28 = vpack.c.bf16 %v526_v25, %v526_v25  ;;  %v1622_v29 = vpop.f32.mrb[1].mxu0 }
 0x1e0   : > { %v635_v24 = vpop.f32.mrb[2].mxu1  ;;  %v529_v30 = vpop.f32.mrb[2].mxu0 }
 0x1e1   : > { %863 = vrot.lane.b32.xlu1 %v2560_v22, %s2177_s14  ;;  %v1643_v26 = vpop.f32.mrb[3].mxu1  ;;  %v755_v27 = vsel %vm750_vm1, %v2560_v22, 0  ;;  %v1623_v31 = vpop.f32.mrb[3].mxu0 }
 0x1e2   : > { %1665 = vmatpush3.bf16.xpose.msra.mxu1 %v755_v27 }
 0x1e3   : > { %1670 = vmatprep.subr.bf16.mxu1 %v2175_v0 }
 0x1e5   : > { %860 = vrot.lane.b32.xlu1 %v2566_v28, %s2177_s14 }
 0x1e9   : > { %1667 = vmatmul.mubr.msk.bf16.vlgmr.msra.gmra.mrb[4].mxu1 %vm750_vm1, %v2566_v28 }
 0x1ea   : > { %1672 = vmatprep.mubr.msk.bf16.mxu1 %vm2176_vm0, %v2175_v0 }
 0x1ff   : > { %v738_v57 = vpop.f32.mrb[4].mxu0 }
 0x200   : > { %v1662_v58 = vpop.f32.mrb[5].mxu0  ;;  %v2598_v60 = vpack.c.bf16 %v738_v57, %v738_v57 }
 0x201   : > { %v741_v59 = vpop.f32.mrb[6].mxu0 }
 0x202   : > { %v1663_v61 = vpop.f32.mrb[7].mxu0  ;;  %v817_v62 = vsel %vm815_vm4, %v2598_v60, 0 }
 0x203   : > { %1671 = vmatpush3.bf16.msra.mxu1 %v817_v62 }
 0x204   : > { %1676 = vmatprep.subr.bf16.mxu1 %v2175_v0 }
 0x253   : > { %v864_v3 = vpop.permute.xlu1 %863 }
 0x254   : > { %v869_v5 = vsel %vm750_vm1, %v864_v3, 0 }
 0x257   : > { %v861_v6 = vpop.permute.xlu1 %860 }
 0x2bc   : > { %v791_v45 = vpop.f32.mrb[4].mxu1 }
 0x2bd   : > { %v797_v46 = vmul.f32 0.17677669, %v791_v45  ;;  %v1668_v47 = vpop.f32.mrb[5].mxu1 }
 0x2be   : > { %v794_v48 = vpop.f32.mrb[6].mxu1 }
 0x2bf   : > { %v1669_v49 = vpop.f32.mrb[7].mxu1  ;;  %v798_v50 = vsel %vm749_vm2, %v797_v46, -1e+09 }
 0x2c0   : > { %v800_v51 = vsel %vm799_vm3, %v798_v50, -inf }
 0x2c1   : > { %801 = vmax.xlane.f32.xlu0 %v800_v51 }
 0x34e   : > { %v802_v52 = vpop.xlane.xlu0 %801 }
 0x34f   : > { %v803_v53 = vsub.f32 %v798_v50, %v802_v52 }
 0x351   : > { %v804_v54 = vmul.f32 1.442695, %v803_v53 }
 0x353   : > { %1868 = vpow2.f32 %v804_v54 }
 0x35d   : > { %v1869_v55 = vpop.eup %1868 }
 0x35e   : > { %v806_v56 = vsel %vm799_vm3, %v1869_v55, 0.0 }
 0x35f   : > { %807 = vadd.xlane.f32.xlu0 %v806_v56 }
 0x3ec   : > { %v808_v63 = vpop.xlane.xlu0 %807 }
 0x3ed   : > { %1870 = vrcp.f32 %v808_v63 }
 0x3f7   : > { %v1871_v1 = vpop.eup %1870 }
 0x3f8   : > { %v810_v2 = vmul.f32 %v1871_v1, %v1869_v55 }
 0x3fa   : > { %v811_v4 = vpack.c.bf16 %v810_v2, %v810_v2 }
 0x3fc   : > { %1673 = vmatmul.mubr.msk.bf16.vlgmr.msra.gmra.mrb[8].mxu1 %vm799_vm3, %v811_v4 }
 0x3fd   : > { %1677 = vmatpush3.bf16.xpose.msra.mxu1 %v869_v5  ;;  %1678 = vmatprep.mubr.msk.bf16.mxu1 %vm2176_vm0, %v2175_v0 }
 0x3fe   : > { %1682 = vmatprep.subr.bf16.mxu1 %v2175_v0 }
 0x404   : > { %1679 = vmatmul.mubr.msk.bf16.vlgmr.msra.gmra.mrb[12].mxu1 %vm750_vm1, %v861_v6 }
 0x405   : > { %1684 = vmatprep.mubr.msk.bf16.mxu1 %vm2176_vm0, %v2175_v0 }
 0x4cf   : > { %v2611_v7 = vpop.f32.mrb[8].mxu1 }
 0x4d0   : > { %v1674_v8 = vpop.f32.mrb[9].mxu1 }
 0x4d1   : > { %v856_v9 = vpop.f32.mrb[10].mxu1 }
 0x4d2   : > { %v1675_v10 = vpop.f32.mrb[11].mxu1 }
 0x4d7   : > { %v905_v11 = vpop.f32.mrb[12].mxu1 }
 0x4d8   : > { %v911_v12 = vmul.f32 0.17677669, %v905_v11  ;;  %v1680_v13 = vpop.f32.mrb[13].mxu1 }
 0x4d9   : > { %v908_v14 = vpop.f32.mrb[14].mxu1 }
 0x4da   : > { %v1681_v15 = vpop.f32.mrb[15].mxu1  ;;  %v912_v16 = vsel %vm749_vm2, %v911_v12, -1e+09 }
 0x4db   : > { %v913_v17 = vsel %vm799_vm3, %v912_v16, -inf }
 0x4dc   : > { %914 = vmax.xlane.f32.xlu0 %v913_v17  ;;  %v1860_v17 = vld [vmem:[#allocation13] sm:$0xff]  }
 0x4dd   : > { %1713 = vmatpush3.bf16.msra.mxu0 %v1860_v17 }
 0x4de   : > { %1714 = vmatprep.subr.bf16.mxu0 %v2175_v0 }
 0x4f2   : > { %926 = vrot.lane.b32.xlu0 %v2598_v60, %s2177_s14 }
 0x4f6   : > { %976 = vrot.lane.b32.xlu0 %v2560_v22, %s2178_s11 }
 0x4fa   : > { %974 = vrot.lane.b32.xlu0 %v2566_v28, %s2178_s11 }
 0x569   : > { %v915_v18 = vpop.xlane.xlu0 %914 }
 0x56a   : > { %v916_v19 = vsub.f32 %v912_v16, %v915_v18  ;;  %v1861_v18 = vld [vmem:[#allocation13 + $0x8] sm:$0xff]  }
 0x56b   : > { %1715 = vmatpush3.bf16.msra.mxu0 %v1861_v18 }
 0x56c   : > { %v917_v20 = vmul.f32 1.442695, %v916_v19  ;;  %v1862_v19 = vld [vmem:[#allocation13 + $0x10] sm:$0xff]   ;;  %1716 = vmatprep.subr.bf16.mxu0 %v2175_v0 }
 0x56d   : > { %v927_v21 = vpop.permute.xlu0 %926 }
 0x56e   : > { %1872 = vpow2.f32 %v917_v20  ;;  %v932_v23 = vsel %vm815_vm4, %v927_v21, 0  ;;  %v1863_v20 = vld [vmem:[#allocation13 + $0x18] sm:$0xff]   ;;  %v1864_v21 = vld [vmem:[#allocation13 + $0x20] sm:$0xff]  }
 0x56f   : > { %1683 = vmatpush3.bf16.msra.mxu1 %v932_v23  ;;  %1717 = vmatpush3.bf16.msra.mxu0 %v1862_v19  ;;  %v1865_v23 = vld [vmem:[#allocation13 + $0x28] sm:$0xff]  }
 0x570   : > { %1688 = vmatprep.subr.bf16.mxu1 %v2175_v0  ;;  %1718 = vmatprep.subr.bf16.mxu0 %v2175_v0 }
 0x571   : > { %v977_v30 = vpop.permute.xlu0 %976 }
 0x572   : > { %v982_v32 = vsel %vm750_vm1, %v977_v30, 0 }
 0x573   : > { %1719 = vmatpush3.bf16.msra.mxu0 %v1863_v20 }
 0x574   : > { %1720 = vmatprep.subr.bf16.mxu0 %v2175_v0 }
 0x575   : > { %v975_v34 = vpop.permute.xlu0 %974 }
 0x577   : > { %1721 = vmatpush3.bf16.msra.mxu0 %v1864_v21 }
 0x578   : > { %v1873_v24 = vpop.eup %1872  ;;  %1722 = vmatprep.subr.bf16.mxu0 %v2175_v0 }
 0x579   : > { %v919_v25 = vsel %vm799_vm3, %v1873_v24, 0.0 }
 0x57a   : > { %920 = vadd.xlane.f32.xlu1 %v919_v25  ;;  %v1867_v25 = vld [vmem:[#allocation13 + $0x38] sm:$0xff]  }
 0x57b   : > { %1723 = vmatpush3.bf16.msra.mxu0 %v1865_v23 }
 0x57c   : > { %1724 = vmatprep.subr.bf16.mxu0 %v2175_v0 }
 0x58b   : > { %1038 = vrot.lane.b32.xlu1 %v2598_v60, %s2178_s11 }
 0x607   : > { %v921_v26 = vpop.xlane.xlu1 %920 }
 0x608   : > { %1874 = vrcp.f32 %v921_v26 }
 0x60b   : > { %v1039_v33 = vpop.permute.xlu1 %1038 }
 0x60c   : > { %v1044_v35 = vsel %vm815_vm4, %v1039_v33, 0 }
 0x612   : > { %v1875_v27 = vpop.eup %1874 }
 0x613   : > { %v923_v29 = vmul.f32 %v1875_v27, %v1873_v24  ;;  %v1866_v24 = vld [vmem:[#allocation13 + $0x30] sm:$0xff]  }
 0x614   : > { %1725 = vmatpush3.bf16.msra.mxu0 %v1866_v24 }
 0x615   : > { %v924_v31 = vpack.c.bf16 %v923_v29, %v923_v29  ;;  %1726 = vmatprep.subr.bf16.mxu0 %v2175_v0 }
 0x617   : > { %1685 = vmatmul.mubr.msk.bf16.vlgmr.msra.gmra.mrb[16].mxu1 %vm799_vm3, %v924_v31 }
 0x618   : > { %1689 = vmatpush3.bf16.xpose.msra.mxu1 %v982_v32  ;;  %1690 = vmatprep.mubr.msk.bf16.mxu1 %vm2176_vm0, %v2175_v0 }
 0x619   : > { %1694 = vmatprep.subr.bf16.mxu1 %v2175_v0  ;;  %1727 = vmatpush3.bf16.msra.mxu0 %v1867_v25 }
 0x61f   : > { %1691 = vmatmul.mubr.msk.bf16.vlgmr.msra.gmra.mrb[20].mxu1 %vm750_vm1, %v975_v34 }
 0x620   : > { %1695 = vmatpush3.bf16.msra.mxu1 %v1044_v35  ;;  %1696 = vmatprep.mubr.msk.bf16.mxu1 %vm2176_vm0, %v2175_v0 }
 0x621   : > { %1700 = vmatprep.subr.bf16.mxu1 %v2175_v0 }
 0x6ea   : > { %v968_v36 = vpop.f32.mrb[16].mxu1 }
 0x6eb   : > { %v1686_v37 = vpop.f32.mrb[17].mxu1 }
 0x6ec   : > { %v971_v38 = vpop.f32.mrb[18].mxu1 }
 0x6ed   : > { %v1687_v39 = vpop.f32.mrb[19].mxu1 }
 0x6f2   : > { %v1018_v40 = vpop.f32.mrb[20].mxu1 }
 0x6f3   : > { %v1024_v41 = vmul.f32 0.17677669, %v1018_v40  ;;  %v1692_v42 = vpop.f32.mrb[21].mxu1 }
 0x6f4   : > { %v1021_v45 = vpop.f32.mrb[22].mxu1 }
 0x6f5   : > { %v1693_v46 = vpop.f32.mrb[23].mxu1  ;;  %v1025_v47 = vsel %vm749_vm2, %v1024_v41, -1e+09 }
 0x6f6   : > { %v1026_v48 = vsel %vm799_vm3, %v1025_v47, -inf }
 0x6f7   : > { %1027 = vmax.xlane.f32.xlu0 %v1026_v48 }
 0x784   : > { %v1028_v49 = vpop.xlane.xlu0 %1027 }
 0x785   : > { %v1029_v50 = vsub.f32 %v1025_v47, %v1028_v49 }
 0x787   : > { %v1030_v51 = vmul.f32 1.442695, %v1029_v50 }
 0x789   : > { %1876 = vpow2.f32 %v1030_v51 }
 0x793   : > { %v1877_v52 = vpop.eup %1876 }
 0x794   : > { %v1032_v53 = vsel %vm799_vm3, %v1877_v52, 0.0 }
 0x795   : > { %1033 = vadd.xlane.f32.xlu1 %v1032_v53 }
 0x7a6   : > { %1088 = vrot.lane.b32.xlu1 %v2560_v22, %s2179_s13 }
 0x7aa   : > { %1086 = vrot.lane.b32.xlu1 %v2566_v28, %s2179_s13 }
 0x822   : > { %v1034_v54 = vpop.xlane.xlu1 %1033 }
 0x823   : > { %1878 = vrcp.f32 %v1034_v54 }
 0x826   : > { %v1089_v57 = vpop.permute.xlu1 %1088 }
 0x827   : > { %v1094_v59 = vsel %vm750_vm1, %v1089_v57, 0 }
 0x82a   : > { %v1087_v61 = vpop.permute.xlu1 %1086 }
 0x82d   : > { %v1879_v55 = vpop.eup %1878 }
 0x82e   : > { %v1036_v56 = vmul.f32 %v1879_v55, %v1877_v52 }
 0x830   : > { %v1037_v58 = vpack.c.bf16 %v1036_v56, %v1036_v56 }
 0x832   : > { %1697 = vmatmul.mubr.msk.bf16.vlgmr.msra.gmra.mrb[24].mxu1 %vm799_vm3, %v1037_v58 }
 0x833   : > { %1701 = vmatpush3.bf16.xpose.msra.mxu1 %v1094_v59  ;;  %1702 = vmatprep.mubr.msk.bf16.mxu1 %vm2176_vm0, %v2175_v0 }
 0x834   : > { %1706 = vmatprep.subr.bf16.mxu1 %v2175_v0 }
 0x83a   : > { %1703 = vmatmul.mubr.msk.bf16.vlgmr.msra.gmra.mrb[28].mxu1 %vm750_vm1, %v1087_v61 }
 0x83b   : > { %1708 = vmatprep.mubr.msk.bf16.mxu1 %vm2176_vm0, %v2175_v0 }
 0x905   : > { %v1080_v22 = vpop.f32.mrb[24].mxu1 }
 0x906   : > { %v1698_v28 = vpop.f32.mrb[25].mxu1 }
 0x907   : > { %v1083_v62 = vpop.f32.mrb[26].mxu1 }
 0x908   : > { %v1699_v63 = vpop.f32.mrb[27].mxu1 }
 0x90d   : > { %v1130_v1 = vpop.f32.mrb[28].mxu1 }
 0x90e   : > { %v1136_v2 = vmul.f32 0.17677669, %v1130_v1  ;;  %v1704_v3 = vpop.f32.mrb[29].mxu1 }
 0x90f   : > { %v1133_v4 = vpop.f32.mrb[30].mxu1 }
 0x910   : > { %v1705_v5 = vpop.f32.mrb[31].mxu1  ;;  %v1137_v6 = vsel %vm749_vm2, %v1136_v2, -1e+09 }
 0x911   : > { %v1138_v8 = vsel %vm799_vm3, %v1137_v6, -inf }
 0x912   : > { %1139 = vmax.xlane.f32.xlu0 %v1138_v8 }
 0x928   : > { %1150 = vrot.lane.b32.xlu0 %v2598_v60, %s2179_s13 }
 0x92c   : > { %1199 = vrot.lane.b32.xlu0 %v968_v36, %s2179_s13 }
 0x930   : > { %1203 = vrot.lane.b32.xlu0 %v1080_v22, %s2178_s11 }
 0x99f   : > { %v1140_v9 = vpop.xlane.xlu0 %1139 }
 0x9a0   : > { %v1141_v10 = vsub.f32 %v1137_v6, %v1140_v9 }
 0x9a2   : > { %v1142_v11 = vmul.f32 1.442695, %v1141_v10 }
 0x9a3   : > { %v1151_v12 = vpop.permute.xlu0 %1150 }
 0x9a4   : > { %1880 = vpow2.f32 %v1142_v11  ;;  %v1156_v13 = vsel %vm815_vm4, %v1151_v12, 0 }
 0x9a5   : > { %1707 = vmatpush3.bf16.msra.mxu1 %v1156_v13 }
 0x9a7   : > { %v1200_v31 = vpop.permute.xlu0 %1199 }
 0x9a8   : > { %v1210_v33 = vsel %vm750_vm1, %v2611_v7, %v1200_v31 }
 0x9ab   : > { %v1204_v32 = vpop.permute.xlu0 %1203 }
 0x9ac   : > { %v1212_v34 = vsel %vm1211_vm5, %v1210_v33, %v1204_v32 }
 0x9ae   : > { %v1881_v14 = vpop.eup %1880 }
 0x9af   : > { %v1144_v43 = vsel %vm799_vm3, %v1881_v14, 0.0 }
 0x9b0   : > { %1145 = vadd.xlane.f32.xlu1 %v1144_v43 }
 0xa3d   : > { %v1146_v44 = vpop.xlane.xlu1 %1145 }
 0xa3e   : > { %1882 = vrcp.f32 %v1146_v44 }
 0xa48   : > { %v1883_v15 = vpop.eup %1882 }
 0xa49   : > { %v1148_v16 = vmul.f32 %v1883_v15, %v1881_v14 }
 0xa4b   : > { %v1149_v60 = vpack.c.bf16 %v1148_v16, %v1148_v16 }
 0xa4d   : > { %1709 = vmatmul.mubr.msk.bf16.vlgmr.msra.gmra.mrb[32].mxu1 %vm799_vm3, %v1149_v60 }
 0xb20   : > { %v1192_v26 = vpop.f32.mrb[32].mxu1 }
 0xb21   : > { %1207 = vrot.lane.b32.xlu0 %v1192_v26, %s2177_s14  ;;  %v1710_v27 = vpop.f32.mrb[33].mxu1 }
 0xb22   : > { %v1195_v29 = vpop.f32.mrb[34].mxu1 }
 0xb23   : > { %v1711_v30 = vpop.f32.mrb[35].mxu1 }
 0xb93   : > { %v1208_v0 = vpop.permute.xlu0 %1207 }
 0xb94   : > { %v1214_v35 = vsel %vm1213_vm6, %v1212_v34, %v1208_v0 }
 0xb95   : > { %v1215_v36 = vpack.c.bf16 %v1214_v35, %v1214_v35 }
 0xb97   : > { %1729 = vmatmul.mubr.bf16.vlgmr.msra.gmra.mrb[8].mxu0 %v1215_v36 }
 0xc6a   : > { %v1314_v7 = vpop.f32.mrb[8].mxu0 }
 0xc6b   : > { %1320 = vst [vmem:[%s422_s20] sm:$0xff] %v1314_v7  ;;  %v1730_v37 = vpop.f32.mrb[9].mxu0 }
 0xc6c   : > { %v1317_v38 = vpop.f32.mrb[10].mxu0 }
 0xc6d   : > { %2099 = shalt.err (!%p2096_p4)
}
 0xc6e   : > { %s2100_s3 = scalar_lea.hbm %s2679_s28, 128  ;;  %s2104_s24 = scalar_lea.hbm %s2786_s12, 256 }
 0xc6f   : > { %p2101_p10 = scmp.ne.s32.totalorder %s2679_s28, %s2100_s3  ;;  %p2105_p12 = scmp.lt.u32.totalorder %s2679_s28, %s2786_s12 }
 0xc70   : > { %p2106_p0 = scmp.lt.u32.totalorder %s2104_s24, %s2100_s3  ;;  %p2108_p9 = scmp.lt.u32.totalorder %s2100_s3, %s2679_s28 }
 0xc71   : > { %p2102_p3 = pnand %p2101_p10, %p2787_p13 }
 0xc72   : > { %p2107_p7 = por %p2106_p0, %p2105_p12 }
 0xc73   : > { %p2103_p8 = pneg %p2102_p3 }
 0xc74   : > { %p2109_p11 = por %p2108_p9, %p2107_p7 }
 0xc76   : > { %p2110_p1 = pnand %p2109_p11, %p2103_p8 }
 0xc78   : > { %2113 = shalt.err (!%p2110_p1)
}
 0xc79   : > { %1754 = dma.vmem_to_hbm [thread:$0]  (%p2787_p13), %s2674_s1, 128, %s2679_s28, %s1322_s9   ;;  %v1731_v39 = vpop.f32.mrb[11].mxu0 }
 0xc7a PF: > { %s2788_s8 = sld [smem:[#allocation20_spill]]  ;;  %s2789_s19 = sld [smem:[#allocation24_spill]] }
 0xc7b   : > { %s2790_s16 = sld [smem:[#allocation21_spill]] }
 0xc80   : > { %s1347_s14 = sand.u32 1, %s2788_s8   ;;  %p2791_p6 = scmp.ne.s32.totalorder %s2789_s19, 0 }
 0xc81   : > { %p2792_p5 = scmp.ge.s32.totalorder %s2790_s16, 2  ;;  %s1348_s11 = scalar_lea.sflag [#allocation4], %s1347_s14 }
 0xc83   : > { %p1780_p2 = pnand %p2792_p5, %p2791_p6 }
 0xc85   : > { %2147 = dma.done.wait (!%p1780_p2), %s1348_s11, 128  }
 0xc86   : > { %2149 = vsyncadd (!%p1780_p2), %s1348_s11, 4294967168  ;;  %s2793_s27 = sld [smem:[#allocation22_spill]]  ;;  %s2794_s13 = sld [smem:[#allocation23_spill]] }
 0xc87   : > { %s2795_s24 = smov %s2156_s25  ;;  %s2796_s25 = smov %s2160_s26 }
 0xc8c   : > { %p25_p4 = scmp.ge.s32.totalorder %s2793_s27, 4   ;;  %s2797_s26 = smov %s2794_s13 }
 0xc8e   :  { %27 = sbr.rel (!%p25_p4) target bundleno = 14 (0xe), region = 133 }
 0xc95   :  { %1353 = vsyncpa [#allocation3], 1 }
 0xc96   :  { %1355 = vsyncpa [#allocation3 + $0x1], 1 }
 0xc97   :  { %1356 = vsyncpa [#allocation6], 1 }
 0xc98   :  { %1358 = vsyncpa [#allocation6 + $0x1], 1 }
 0xc99   :  { %1359 = vsyncpa [#allocation9], 1 }
 0xc9a   :  { %1360 = vsyncpa [#allocation12], 1 }
 0xc9b   :  { %1361 = vsyncpa [#allocation4], 1 }
 0xc9c   :  { %1363 = vsyncpa [#allocation4 + $0x1], 1 }

</bundles_post_ra>
